<compile_context>
chip_gen: v7x
topology: tpu7x:2x2x1
jax: 0.10.0
libtpu: 0.0.40
codegen_flags: <defaults>
</compile_context>

<pallas_src>
import numpy as np

import jax
import jax.numpy as jnp
from jax.experimental import pallas as pl
from jax.experimental.pallas import tpu as pltpu


def _round_up(x: int, m: int) -> int:
    return ((x + m - 1) // m) * m


# ---------------------------------------------------------------------------
# Glue: bilinear interpolation weight matrix (align_corners=False), padded to
# (out_pad, in_pad) with zeros so padded rows/cols contribute nothing.
#   src = max(0, (dst + 0.5) * in/out - 0.5); lo = floor(src);
#   hi = min(lo + 1, in - 1); frac = src - lo
# ---------------------------------------------------------------------------
def _bilinear_weight_matrix(out_size: int, in_size: int,
                            out_pad: int, in_pad: int,
                            dtype=jnp.bfloat16) -> jnp.ndarray:
    i = jnp.arange(out_size, dtype=jnp.float32)
    src = (i + 0.5) * (in_size / out_size) - 0.5
    src = jnp.maximum(src, 0.0)
    lo = jnp.floor(src).astype(jnp.int32)
    lo = jnp.minimum(lo, in_size - 1)
    hi = jnp.minimum(lo + 1, in_size - 1)
    frac = src - lo.astype(jnp.float32)
    rows = jnp.arange(out_size)
    w = jnp.zeros((out_size, in_size), dtype=jnp.float32)
    w = w.at[rows, lo].add(1.0 - frac)
    w = w.at[rows, hi].add(frac)
    w = jnp.pad(w, ((0, out_pad - out_size), (0, in_pad - in_size)))
    return w.astype(dtype)


# ---------------------------------------------------------------------------
# Pallas kernel: one (TM, TN) output tile of one channel.
#   grid = (c, i, j)   (j innermost, "arbitrary": scratch reuse)
#   tmp = Wh[i-tile] @ img[c]      computed once per (c, i) at j == 0
#   out[c, i-tile, j-tile] = tmp @ WwT[:, j-tile]
# ---------------------------------------------------------------------------
def _resize_kernel(wh_ref, img_ref, wwt_ref, out_ref, tmp_ref):
    @pl.when(pl.program_id(2) == 0)
    def _():
        tmp_ref[...] = jnp.dot(
            wh_ref[...], img_ref[0], preferred_element_type=jnp.float32
        ).astype(tmp_ref.dtype)

    out_ref[0] = jnp.dot(
        tmp_ref[...], wwt_ref[...], preferred_element_type=jnp.float32
    ).astype(out_ref.dtype)


def bilinear_resize_chw(image: jnp.ndarray, new_h: int, new_w: int,
                        *, tile_m: int = 256, tile_n: int = 256) -> jnp.ndarray:
    """image: (C, H, W) float -> (C, new_h, new_w) same dtype."""
    c, h, w = image.shape
    out_dtype = image.dtype

    # Lane/sublane aligned padded shapes.
    h_pad = _round_up(h, 8)
    w_pad = _round_up(w, 128)

    nh_pad = _round_up(new_h, 8)
    if nh_pad > tile_m:
        tm = tile_m
        nh_pad = _round_up(new_h, tm)
    else:
        tm = nh_pad

    nw_pad = _round_up(new_w, 128)
    if nw_pad > tile_n:
        tn = tile_n
        nw_pad = _round_up(new_w, tn)
    else:
        tn = nw_pad

    # bf16 operands, f32 accumulation inside the kernel.
    wh = _bilinear_weight_matrix(new_h, h, nh_pad, h_pad)        # (nh_pad, h_pad)
    wwt = _bilinear_weight_matrix(new_w, w, nw_pad, w_pad).T     # (w_pad, nw_pad)
    img = jnp.pad(image, ((0, 0), (0, h_pad - h), (0, w_pad - w))
                  ).astype(jnp.bfloat16)

    grid = (c, nh_pad // tm, nw_pad // tn)

    # Double-buffered per-block footprint + scratch (+ headroom), capped well
    # under v7x's 64 MiB physical VMEM.
    vmem_bytes = (
        2 * (tm * h_pad * 2)        # Wh tile (bf16)
        + 2 * (h_pad * w_pad * 2)   # image channel (bf16)
        + 2 * (w_pad * tn * 2)      # WwT tile (bf16)
        + 2 * (tm * tn * 4)         # output tile (f32)
        + tm * w_pad * 2            # scratch (bf16)
    )
    vmem_limit = int(min(max(2 * vmem_bytes + (4 << 20), 16 << 20), 48 << 20))

    out_padded = pl.pallas_call(
        _resize_kernel,
        out_shape=jax.ShapeDtypeStruct((c, nh_pad, nw_pad), out_dtype),
        grid_spec=pltpu.PrefetchScalarGridSpec(
            num_scalar_prefetch=0,
            grid=grid,
            in_specs=[
                pl.BlockSpec((tm, h_pad), lambda ci, i, j: (i, 0)),
                pl.BlockSpec((1, h_pad, w_pad), lambda ci, i, j: (ci, 0, 0)),
                pl.BlockSpec((w_pad, tn), lambda ci, i, j: (0, j)),
            ],
            out_specs=pl.BlockSpec((1, tm, tn), lambda ci, i, j: (ci, i, j)),
            scratch_shapes=[pltpu.VMEM((tm, w_pad), jnp.bfloat16)],
        ),
        compiler_params=pltpu.CompilerParams(
            dimension_semantics=("parallel", "parallel", "arbitrary"),
            vmem_limit_bytes=vmem_limit,
        ),
    )(wh, img, wwt)

    return out_padded[:, :new_h, :new_w]


# ---------------------------------------------------------------------------
# ScaleJitter forward (JAX/Pallas).
# ---------------------------------------------------------------------------
class ScaleJitter:
    def __init__(self, target_size, scale_range=(0.1, 2.0)):
        self.target_size = target_size
        self.scale_range = scale_range

    def __call__(self, seed, image, target=None):
        if image.ndim not in (2, 3):
            raise ValueError(
                f"image should be 2/3 dimensional. Got {image.ndim} dimensions."
            )
        if image.ndim == 2:
            image = image[None, :, :]
        _, orig_height, orig_width = image.shape

        # Host-side random scale (numpy): no device->host sync, and the
        # resulting shapes must be static for the kernel anyway.
        rng = seed if isinstance(seed, np.random.Generator) \
            else np.random.default_rng(seed)
        u = float(rng.uniform())
        scale = self.scale_range[0] + u * (self.scale_range[1] - self.scale_range[0])
        # NOTE: index mixing below reproduces the reference exactly.
        r = min(self.target_size[1] / orig_height,
                self.target_size[0] / orig_width) * scale
        new_width = int(orig_width * r)
        new_height = int(orig_height * r)

        image = bilinear_resize_chw(image, new_height, new_width)

        if target is not None:
            target = dict(target)
            sx = new_width / orig_width
            sy = new_height / orig_height
            # Tiny (N,4) elementwise multiply: plain JAX (a Pallas launch
            # would cost more than the op itself).
            scale_vec = jnp.array([sx, sy, sx, sy], dtype=target["boxes"].dtype)
            target["boxes"] = target["boxes"] * scale_vec
            # TODO(synk): nearest-neighbor mask resize not implemented (same
            # two-matmul structure with one-hot weight matrices).
        return image, target


if __name__ == "__main__":
    key = jax.random.PRNGKey(0)
    k_img, k_box = jax.random.split(key, 2)

    C, H, W = 3, 16, 16
    image = jax.random.normal(k_img, (C, H, W), dtype=jnp.float32)
    boxes = jax.random.uniform(k_box, (4, 4), dtype=jnp.float32) * 16.0
    target = {"boxes": boxes}

    jitter = ScaleJitter(target_size=(32, 32), scale_range=(0.1, 2.0))
    out_image, out_target = jitter(0, image, target)

    jax.block_until_ready(out_image)
    jax.block_until_ready(out_target["boxes"])
    print("KERNEL_OK")
</pallas_src>

<mosaic_0001>
module attributes {stable_mosaic.version = 11 : i64} {
  func.func @_resize_kernel(%arg0: i32, %arg1: i32, %arg2: i32, %arg3: memref<48x16xbf16, #tpu.memory_space<vmem>>, %arg4: memref<1x16x128xbf16, #tpu.memory_space<vmem>>, %arg5: memref<128x128xbf16, #tpu.memory_space<vmem>>, %arg6: memref<1x48x128xf32, #tpu.memory_space<vmem>>, %arg7: memref<48x128xbf16, #tpu.memory_space<vmem>>) attributes {dimension_semantics = [#tpu.dimension_semantics<parallel>, #tpu.dimension_semantics<parallel>, #tpu.dimension_semantics<arbitrary>], iteration_bounds = array<i64: 3, 1, 1>, scalar_prefetch = 0 : i64, scratch_operands = 1 : i64, tpu.core_type = #tpu.core_type<tc>, window_params = [{transform_indices = @transform_0, window_bounds = array<i64: 48, 16>}, {transform_indices = @transform_1, window_bounds = array<i64: 1, 16, 128>}, {transform_indices = @transform_2, window_bounds = array<i64: 128, 128>}, {transform_indices = @transform_3, window_bounds = array<i64: 1, 48, 128>}]} {
    %c0_i32 = arith.constant 0 : i32
    %0 = arith.cmpi eq, %arg2, %c0_i32 : i32
    %1 = arith.extui %0 : i1 to i32
    %c0_i32_0 = arith.constant 0 : i32
    %2 = arith.cmpi ne, %1, %c0_i32_0 : i32
    scf.if %2 {
      %c0_7 = arith.constant 0 : index
      %c0_8 = arith.constant 0 : index
      %9 = vector.load %arg3[%c0_7, %c0_8] : memref<48x16xbf16, #tpu.memory_space<vmem>>, vector<48x16xbf16>
      %c0_9 = arith.constant 0 : index
      %c0_10 = arith.constant 0 : index
      %c0_11 = arith.constant 0 : index
      %10 = vector.load %arg4[%c0_9, %c0_10, %c0_11] : memref<1x16x128xbf16, #tpu.memory_space<vmem>>, vector<1x16x128xbf16>
      %11 = vector.shape_cast %10 : vector<1x16x128xbf16> to vector<16x128xbf16>
      %cst_12 = arith.constant dense<0.000000e+00> : vector<48x128xf32>
      %12 = tpu.matmul %9, %11, %cst_12 {dimension_numbers = #tpu.dot_dimension_numbers<[1], [0], [0], [1], [0, 0, 1, 1], [], []>} : vector<48x16xbf16>, vector<16x128xbf16>, vector<48x128xf32> -> vector<48x128xf32>
      %13 = arith.truncf %12 : vector<48x128xf32> to vector<48x128xbf16>
      %c0_13 = arith.constant 0 : index
      %c0_14 = arith.constant 0 : index
      %14 = vector.load %arg7[%c0_13, %c0_14] : memref<48x128xbf16, #tpu.memory_space<vmem>>, vector<48x128xbf16>
      tpu.vector_store %arg7[%c0_13, %c0_14], %13 {strides = array<i32>} : memref<48x128xbf16, #tpu.memory_space<vmem>>, vector<48x128xbf16>,
    } else {
    }
    %c0 = arith.constant 0 : index
    %c0_1 = arith.constant 0 : index
    %3 = vector.load %arg7[%c0, %c0_1] : memref<48x128xbf16, #tpu.memory_space<vmem>>, vector<48x128xbf16>
    %c0_2 = arith.constant 0 : index
    %c0_3 = arith.constant 0 : index
    %4 = vector.load %arg5[%c0_2, %c0_3] : memref<128x128xbf16, #tpu.memory_space<vmem>>, vector<128x128xbf16>
    %cst = arith.constant dense<0.000000e+00> : vector<48x128xf32>
    %5 = tpu.matmul %3, %4, %cst {dimension_numbers = #tpu.dot_dimension_numbers<[1], [0], [0], [1], [0, 0, 1, 1], [], []>} : vector<48x128xbf16>, vector<128x128xbf16>, vector<48x128xf32> -> vector<48x128xf32>
    %c0_4 = arith.constant 0 : index
    %c0_5 = arith.constant 0 : index
    %c0_6 = arith.constant 0 : index
    %6 = vector.load %arg6[%c0_4, %c0_5, %c0_6] : memref<1x48x128xf32, #tpu.memory_space<vmem>>, vector<1x48x128xf32>
    %7 = vector.shape_cast %6 : vector<1x48x128xf32> to vector<48x128xf32>
    %8 = vector.shape_cast %5 : vector<48x128xf32> to vector<1x48x128xf32>
    tpu.vector_store %arg6[%c0_4, %c0_5, %c0_6], %8 {strides = array<i32>} : memref<1x48x128xf32, #tpu.memory_space<vmem>>, vector<1x48x128xf32>,
    return
  }
  func.func @transform_0(%arg0: i32, %arg1: i32, %arg2: i32) -> (i32, i32) {
    %c0_i32 = arith.constant 0 : i32
    %c0_i32_0 = arith.constant 0 : i32
    return %arg1, %c0_i32 : i32, i32
  }
  func.func @transform_1(%arg0: i32, %arg1: i32, %arg2: i32) -> (i32, i32, i32) {
    %c0_i32 = arith.constant 0 : i32
    %c0_i32_0 = arith.constant 0 : i32
    %c0_i32_1 = arith.constant 0 : i32
    return %arg0, %c0_i32, %c0_i32_0 : i32, i32, i32
  }
  func.func @transform_2(%arg0: i32, %arg1: i32, %arg2: i32) -> (i32, i32) {
    %c0_i32 = arith.constant 0 : i32
    %c0_i32_0 = arith.constant 0 : i32
    return %c0_i32, %arg2 : i32, i32
  }
  func.func @transform_3(%arg0: i32, %arg1: i32, %arg2: i32) -> (i32, i32, i32) {
    %c0_i32 = arith.constant 0 : i32
    return %arg0, %arg1, %arg2 : i32, i32, i32
  }
}

</mosaic_0001>

<bundles_post_ra>
// kernel: tpu_custom_call.1
= control target key start
LH: loop header
LB: loop body
LE: loop exit
PB: predicated region body
PF: predicated region fallthrough
CT: control target
= control target key end

     0   :  { %8 = vsyncpa [#allocation4], 0  ;;  %s1119_s0 = inlined_call_operand.vmem [shape: bf16[48,16], index: 0, kind: input, shape index: {}]   ;;  %s1120_s1 = inlined_call_operand.vmem [shape: bf16[3,16,128], index: 1, kind: input, shape index: {}]   ;;  %s1121_s2 = inlined_call_operand.hbm [shape: bf16[128,128], index: 2, kind: input, shape index: {}]   ;;  %s1122_s3 = inlined_call_operand.hbm [shape: f32[3,48,128], index: 3, kind: output, shape index: {}]  }
   0x1   :  { %9 = vsyncpa [#allocation5], 0 }
   0x2   :  { %11 = vsyncpa [#allocation5 + $0x1], 0  ;;  %s925_s12 = smov 0   ;;  %s927_s13 = smov 0  }
   0x3   :  { %s929_s14 = smov 0   ;;  %s931_s15 = smov 0  }
   0x4   :  { %s933_s16 = smov 0   ;;  %s935_s17 = smov 0  }
   0x5 LB: > { %s597_s18 = sadd.s32 4294967295, %s895_s17   ;;  %s598_s19 = sadd.s32 4294967294, %s895_s17   ;;  %s895_s17 = sphi %s935_s17, %s17_s17   ;;  %s891_s16 = sphi %s933_s16, %s1140_s16   ;;  %s887_s15 = sphi %s931_s15, %s1139_s15   ;;  %s883_s14 = sphi %s929_s14, %s1138_s14   ;;  %s879_s13 = sphi %s927_s13, %s1137_s13   ;;  %s875_s12 = sphi %s925_s12, %s1136_s12  }
   0x6   : > { %s36_s20 = sadd.s32 1, %s891_s16  ;;  %s125_s21 = sadd.s32 1, %s883_s14 }
   0x7   : > { %p38_p0 = scmp.ge.s32.totalorder %s36_s20, 3  ;;  %p135_p1 = scmp.ne.s32.totalorder %s883_s14, %s879_s13 }
   0x8   : > { %p136_p2 = scmp.eq.s32.totalorder %s597_s18, 2  ;;  %p141_p3 = scmp.ne.s32.totalorder %s879_s13, %s875_s12 }
   0x9   : > { %s1142_s20 = smov (%p38_p0, %s36_s20), 0  ;;  %p142_p5 = scmp.eq.s32.totalorder %s598_s19, 2 }
   0xa   : > { %p965_p4 = por %p136_p2, %p135_p1  ;;  %s118_s23 = ssub.s32 %s891_s16, %s1142_s20 }
   0xb   : > { %p599_p6 = scmp.ge.s32.totalorder %s895_s17, 1  ;;  %p123_p7 = scmp.eq.s32.totalorder %s118_s23, 0 }
   0xc   : > { %s1127_s22 = scalar_select %p965_p4, 1, 0 }
   0xd   : > { %p972_p8 = por %p142_p5, %p141_p3  ;;  %p149_p9 = scmp.lt.s32.totalorder %s895_s17, 4 }
   0xe   : > { %s978_s25 = scalar_select %p123_p7, %s883_s14, %s125_s21  }
   0xf   : > { %s1128_s24 = scalar_select %p972_p8, 1, 0 }
  0x10   : > { %p980_p10 = pnand %p599_p6, %p149_p9  ;;  %p984_p11 = scmp.eq.s32.totalorder %s597_s18, 0 }
  0x11   : > { %s897_s28 = smov [#allocation3]   ;;  %s785_s6 = scalar_lea.hbm %s1121_s2, 1024 }
  0x12   : > { %s1129_s26 = scalar_select %p980_p10, 1, 0 }
  0x13   : > { %s1130_s27 = scalar_select %p984_p11, 1, 0 }
  0x14   : > { %p707_p12 = pneg %p980_p10  ;;  %s172_s29 = sshll.u32 %s897_s28, 4  ;;  %s173_s29 = int_to_ptr.vmem [resolvable:$true] %s172_s29 }
  0x15   : > { %p786_p0 = scmp.ne.s32.totalorder %s1121_s2, %s785_s6  ;;  %p792_p5 = scmp.lt.u32.totalorder %s785_s6, %s1121_s2 }
  0x16   : > { %p992_p13 = pnand %p984_p11, %p707_p12 }
  0x18   : > { %p787_p1 = pneg %p992_p13 }
  0x1a   : > { %p788_p2 = pnand %p787_p1, %p786_p0 }
  0x1c   : > { %p789_p3 = pneg %p788_p2 }
  0x1e   : > { %p794_p6 = pnand %p792_p5, %p789_p3 }
  0x20   : > { %797 = shalt.err (!%p794_p6)
}
  0x21   : > { %s798_s11 = scalar_lea.vmem %s173_s29, 1024  ;;  %p806_p8 = scmp.lt.s32.totalorder %s173_s29, %s173_s29 }
  0x22   : > { %p799_p7 = scmp.ne.s32.totalorder %s173_s29, %s798_s11  ;;  %p807_p4 = scmp.lt.s32.totalorder %s798_s11, %s798_s11 }
  0x24   : > { %p801_p9 = pnand %p799_p7, %p787_p1  ;;  %p808_p11 = por %p807_p4, %p806_p8 }
  0x26   : > { %p802_p12 = pneg %p801_p9 }
  0x28   : > { %p809_p10 = pnand %p808_p11, %p802_p12 }
  0x2a   : > { %812 = shalt.err (!%p809_p10)
}
  0x2b   : > { %s898_s18 = smov 64   ;;  %s899_s19 = smov 4  }
  0x2c   : > { %710 = dma.hbm_to_vmem [thread:$0]  (!%p992_p13), %s1121_s2, 1024, %s173_s29, [#allocation4], %s898_s18, %s898_s18, %s899_s19  }
  0x2d   : > { %p1132_p0 = scmp.ne.s32.totalorder %s1129_s26, 0 }
  0x2e   : > { %p1133_p2 = scmp.ne.s32.totalorder (!%p1132_p0), %s1130_s27, 0 }
  0x2f   : > { %196 = sbr.rel (%p1132_p0) target bundleno = 526 (0x20e), region = 32 }
  0x36   : > { %866 = dma.done.wait (%p1133_p2), [#allocation4], 1024  }
  0x37   : > { %868 = vsyncadd (%p1133_p2), [#allocation4], 4294966272  ;;  %p231_p4 = scmp.lt.s32.totalorder %s887_s15, 2  ;;  %v900_v0 = vmov 0.0   ;;  %vm901_vm0 = vmmov 0   ;;  %v774_v2 = vld [vmem:[%s1119_s0] sm:$0xff]  }
  0x38   : > { %641 = vmatprep.subr.bf16.mxu0 %v900_v0  ;;  %643 = vmatprep.mubr.msk.bf16.mxu0 %vm901_vm0, %v900_v0  ;;  %vm271_vm1 = vcmask 130048   ;;  %v777_v3 = vld [vmem:[#allocation3] sm:$0xff]   ;;  %v778_v4 = vld [vmem:[#allocation3 + $0x8] sm:$0xff]   ;;  %v775_v5 = vld [vmem:[%s1119_s0 + $0x8] sm:$0xff]   ;;  %s222_s10 = sand.u32 1, %s879_s13   ;;  %s700_s19 = smul.u32 768, %s887_s15 }
  0x39   : > { %s232_s28 = scalar_select %p231_p4, %s887_s15, 2  ;;  %683 = vmatprep.subr.bf16.mxu1 %v900_v0  ;;  %675 = vmatprep.mubr.msk.bf16.mxu1 %vm901_vm0, %v900_v0  ;;  %v779_v6 = vld [vmem:[#allocation3 + $0x10] sm:$0xff]   ;;  %v780_v7 = vld [vmem:[#allocation3 + $0x18] sm:$0xff]   ;;  %v776_v8 = vld [vmem:[%s1119_s0 + $0x10] sm:$0xff]  }
  0x3a   : > { %691 = vmatpush3.bf16.msra.mxu1 %v777_v3  ;;  %v781_v9 = vld [vmem:[#allocation3 + $0x20] sm:$0xff]   ;;  %v782_v10 = vld [vmem:[#allocation3 + $0x28] sm:$0xff]   ;;  %v783_v11 = vld [vmem:[#allocation3 + $0x30] sm:$0xff]   ;;  %s699_s11 = smul.u32 48, %s222_s10  ;;  %s1073_s29 = scalar_lea.sflag [#allocation5], %s222_s10 }
  0x3b   : > { %s625_s26 = sshll.u32 %s232_s28, 3  ;;  %684 = vmatprep.subr.bf16.mxu1 %v900_v0  ;;  %v784_v12 = vld [vmem:[#allocation3 + $0x38] sm:$0xff]   ;;  %p1134_p10 = scmp.ne.s32.totalorder %s1127_s22, 0 }
  0x3c   : > { %s235_s30 = scalar_lea.vmem %s1120_s1, %s625_s26  ;;  %s224_s18 = scalar_lea.vmem [#allocation6], %s699_s11 }
  0x3d   : > { %v773_v1 = vld [vmem:[%s235_s30] sm:$0xff]   ;;  %s491_s21 = sshll.u32 %s224_s18, 4  ;;  %s1071_s26 = scalar_lea.hbm %s1122_s3, %s700_s19  ;;  %s1066_s21 = int_to_ptr.vmem [resolvable:$true] %s491_s21 }
  0x3e   : > { %642 = vmatpush3.bf16.msra.mxu0 %v773_v1  ;;  %692 = vmatpush3.bf16.msra.mxu1 %v778_v4  ;;  %s813_s15 = scalar_lea.vmem %s1066_s21, 768  ;;  %s902_s27 = smov [#allocation6]  }
  0x3f   : > { %655 = vmatprep.subr.bf16.mxu0 %v900_v0  ;;  %685 = vmatprep.subr.bf16.mxu1 %v900_v0  ;;  %p814_p8 = scmp.ne.s32.totalorder %s1066_s21, %s813_s15  ;;  %s817_s30 = sshll.u32 %s902_s27, 4  ;;  %s818_s30 = int_to_ptr.vmem [resolvable:$false] %s817_s30 }
  0x40   : > { %s819_s4 = scalar_lea.vmem %s818_s30, 1536  ;;  %p820_p1 = scmp.lt.s32.totalorder %s1066_s21, %s818_s30 }
  0x41   : > { %644 = vmatmul.mubr.msk.bf16.vlgmr.msra.gmra.mrb[0].mxu0 %vm271_vm1, %v774_v2  ;;  %p815_p11 = pnand %p814_p8, %p1134_p10  ;;  %p821_p3 = scmp.lt.s32.totalorder %s819_s4, %s813_s15 }
  0x42   : > { %647 = vmatprep.mubr.msk.bf16.mxu0 %vm901_vm0, %v900_v0  ;;  %656 = vmatpush3.bf16.msra.mxu0 %v777_v3 }
  0x43   : > { %657 = vmatprep.subr.bf16.mxu0 %v900_v0  ;;  %693 = vmatpush3.bf16.msra.mxu1 %v779_v6  ;;  %p816_p13 = pneg %p815_p11  ;;  %p822_p5 = por %p821_p3, %p820_p1 }
  0x44   : > { %686 = vmatprep.subr.bf16.mxu1 %v900_v0 }
  0x45   : > { %p823_p6 = pnand %p822_p5, %p816_p13 }
  0x46   : > { %658 = vmatpush3.bf16.msra.mxu0 %v778_v4 }
  0x47   : > { %659 = vmatprep.subr.bf16.mxu0 %v900_v0  ;;  %694 = vmatpush3.bf16.msra.mxu1 %v780_v7 }
  0x48   : > { %687 = vmatprep.subr.bf16.mxu1 %v900_v0 }
  0x49   : > { %648 = vmatmul.mubr.msk.bf16.gmra.mrb[4].mxu0 %vm271_vm1, %v775_v5 }
  0x4a   : > { %651 = vmatprep.mubr.msk.bf16.mxu0 %vm901_vm0, %v900_v0  ;;  %660 = vmatpush3.bf16.msra.mxu0 %v779_v6 }
  0x4b   : > { %661 = vmatprep.subr.bf16.mxu0 %v900_v0  ;;  %695 = vmatpush3.bf16.msra.mxu1 %v781_v9 }
  0x4c   : > { %688 = vmatprep.subr.bf16.mxu1 %v900_v0 }
  0x4e   : > { %662 = vmatpush3.bf16.msra.mxu0 %v780_v7 }
  0x4f   : > { %663 = vmatprep.subr.bf16.mxu0 %v900_v0  ;;  %696 = vmatpush3.bf16.msra.mxu1 %v782_v10 }
  0x50   : > { %689 = vmatprep.subr.bf16.mxu1 %v900_v0 }
  0x51   : > { %652 = vmatmul.mubr.msk.bf16.gmra.mrb[8].mxu0 %vm271_vm1, %v776_v8 }
  0x52   : > { %664 = vmatpush3.bf16.msra.mxu0 %v781_v9  ;;  %671 = vmatprep.mubr.msk.bf16.mxu0 %vm901_vm0, %v900_v0 }
  0x53   : > { %665 = vmatprep.subr.bf16.mxu0 %v900_v0  ;;  %697 = vmatpush3.bf16.msra.mxu1 %v783_v11 }
  0x54   : > { %690 = vmatprep.subr.bf16.mxu1 %v900_v0 }
  0x56   : > { %666 = vmatpush3.bf16.msra.mxu0 %v782_v10 }
  0x57   : > { %667 = vmatprep.subr.bf16.mxu0 %v900_v0  ;;  %698 = vmatpush3.bf16.msra.mxu1 %v784_v12 }
  0x5a   : > { %668 = vmatpush3.bf16.msra.mxu0 %v783_v11 }
  0x5b   : > { %669 = vmatprep.subr.bf16.mxu0 %v900_v0 }
  0x5e   : > { %670 = vmatpush3.bf16.msra.mxu0 %v784_v12 }
 0x114   : > { %v315_v13 = vpop.f32.mrb[0].mxu0 }
 0x115   : > { %v645_v14 = vpop.f32.mrb[1].mxu0 }
 0x116   : > { %v318_v15 = vpop.f32.mrb[2].mxu0 }
 0x117   : > { %v338_v16 = vpack.c.bf16 %v318_v15, %v315_v13  ;;  %v646_v17 = vpop.f32.mrb[3].mxu0 }
 0x119   : > { %672 = vmatmul.mubr.bf16.vlgmr.msra.gmra.mrb[12].mxu0 %v338_v16 }
 0x11c   : > { %v323_v18 = vpop.f32.mrb[4].mxu0 }
 0x11d   : > { %v649_v19 = vpop.f32.mrb[5].mxu0 }
 0x11e   : > { %v326_v20 = vpop.f32.mrb[6].mxu0 }
 0x11f   : > { %v339_v21 = vpack.c.bf16 %v326_v20, %v323_v18  ;;  %v650_v22 = vpop.f32.mrb[7].mxu0 }
 0x121   : > { %676 = vmatmul.mubr.bf16.vlgmr.msra.gmra.mrb[0].mxu1 %v339_v21 }
 0x122   : > { %679 = vmatprep.mubr.msk.bf16.mxu1 %vm901_vm0, %v900_v0 }
 0x124   : > { %v331_v23 = vpop.f32.mrb[8].mxu0 }
 0x125   : > { %v653_v24 = vpop.f32.mrb[9].mxu0 }
 0x126   : > { %v334_v25 = vpop.f32.mrb[10].mxu0 }
 0x127   : > { %v340_v26 = vpack.c.bf16 %v334_v25, %v331_v23  ;;  %v654_v27 = vpop.f32.mrb[11].mxu0 }
 0x129   : > { %680 = vmatmul.mubr.bf16.gmra.mrb[4].mxu1 %v340_v26 }
 0x1ec   : > { %v445_v28 = vpop.f32.mrb[12].mxu0 }
 0x1ed   : > { %468 = vst [vmem:[%s224_s18] sm:$0xff] %v445_v28  ;;  %v673_v29 = vpop.f32.mrb[13].mxu0 }
 0x1ee   : > { %v448_v30 = vpop.f32.mrb[14].mxu0 }
 0x1ef   : > { %469 = vst [vmem:[%s224_s18 + $0x8] sm:$0xff] %v448_v30  ;;  %v674_v31 = vpop.f32.mrb[15].mxu0 }
 0x1f4   : > { %v453_v32 = vpop.f32.mrb[0].mxu1 }
 0x1f5   : > { %470 = vst [vmem:[%s224_s18 + $0x10] sm:$0xff] %v453_v32  ;;  %v677_v33 = vpop.f32.mrb[1].mxu1 }
 0x1f6   : > { %v456_v34 = vpop.f32.mrb[2].mxu1 }
 0x1f7   : > { %471 = vst [vmem:[%s224_s18 + $0x18] sm:$0xff] %v456_v34  ;;  %v678_v35 = vpop.f32.mrb[3].mxu1 }
 0x1fc   : > { %v461_v36 = vpop.f32.mrb[4].mxu1 }
 0x1fd   : > { %472 = vst [vmem:[%s224_s18 + $0x20] sm:$0xff] %v461_v36  ;;  %v681_v37 = vpop.f32.mrb[5].mxu1 }
 0x1fe   : > { %v464_v38 = vpop.f32.mrb[6].mxu1 }
 0x1ff   : > { %473 = vst [vmem:[%s224_s18 + $0x28] sm:$0xff] %v464_v38  ;;  %v682_v39 = vpop.f32.mrb[7].mxu1 }
 0x200   : > { %826 = shalt.err (!%p823_p6)
}
 0x201   : > { %s827_s5 = scalar_lea.hbm %s1071_s26, 768  ;;  %s831_s8 = scalar_lea.hbm %s1122_s3, 2304 }
 0x202   : > { %p828_p7 = scmp.ne.s32.totalorder %s1071_s26, %s827_s5  ;;  %p832_p0 = scmp.lt.u32.totalorder %s1071_s26, %s1122_s3 }
 0x203   : > { %p833_p2 = scmp.lt.u32.totalorder %s831_s8, %s827_s5  ;;  %p835_p8 = scmp.lt.u32.totalorder %s827_s5, %s1071_s26 }
 0x204   : > { %p829_p9 = pnand %p828_p7, %p1134_p10 }
 0x205   : > { %p834_p4 = por %p833_p2, %p832_p0 }
 0x206   : > { %p830_p12 = pneg %p829_p9 }
 0x207   : > { %p836_p11 = por %p835_p8, %p834_p4 }
 0x209   : > { %p837_p13 = pnand %p836_p11, %p830_p12 }
 0x20b   : > { %840 = shalt.err (!%p837_p13)
}
 0x20c   : > { %s903_s11 = smov 128   ;;  %s904_s18 = smov 8  }
 0x20d   : > { %705 = dma.vmem_to_hbm [thread:$0]  (%p1134_p10), %s1066_s21, 768, %s1071_s26, %s1073_s29, %s903_s11, %s903_s11, %s904_s18  }
 0x20e PF: > { %p717_p1 = scmp.ge.s32.totalorder %s895_s17, 2  ;;  %s506_s19 = sand.u32 1, %s875_s12  }
 0x20f   : > { %p1135_p3 = scmp.ne.s32.totalorder %s1128_s24, 0  ;;  %s507_s23 = scalar_lea.sflag [#allocation5], %s506_s19 }
 0x211   : > { %p712_p5 = pnand %p717_p1, %p1135_p3 }
 0x213   : > { %870 = dma.done.wait (!%p712_p5), %s507_s23, 768  }
 0x214   : > { %872 = vsyncadd (!%p712_p5), %s507_s23, 4294966528  ;;  %s17_s17 = sadd.s32 1, %s895_s17   ;;  %s1136_s12 = smov %s879_s13 }
 0x215   : > { %p14_p6 = scmp.ge.s32.totalorder %s17_s17, 5   ;;  %s1137_s13 = smov %s883_s14 }
 0x216   : > { %s1138_s14 = smov %s978_s25  ;;  %s1139_s15 = smov %s891_s16 }
 0x217   : > { %s1140_s16 = smov %s1142_s20  ;;  %16 = sbr.rel (!%p14_p6) target bundleno = 5 (0x5), region = 80 }
 0x21e   :  { %512 = vsyncpa [#allocation4], 1 }
 0x21f   :  { %514 = vsyncpa [#allocation4 + $0x1], 1 }
 0x220   :  { %515 = vsyncpa [#allocation5], 1 }
 0x221   :  { %517 = vsyncpa [#allocation5 + $0x1], 1 }

</bundles_post_ra>
